<compile_context>
chip_gen: v7x
topology: tpu7x:2x2x1
jax: 0.10.0
libtpu: 0.0.40
codegen_flags: <defaults>
</compile_context>

<pallas_src>
import jax
import jax.numpy as jnp
from jax import lax
from jax.experimental import pallas as pl
from jax.experimental.pallas import tpu as pltpu


# ----------------------------------------------------------------------------
# Parameter construction (deterministic, BN folded into 1x1 convs)
# ----------------------------------------------------------------------------
def _fold_bn(w, gamma, beta, mean, var, eps=1e-5):
    """w: (C_out, C_in) 1x1-conv weight (torch layout).
    Returns (C_in, C_out) folded weight and (1, C_out) folded bias."""
    scale = gamma / jnp.sqrt(var + eps)
    w_f = (w * scale[:, None]).T                  # (C_in, C_out)
    b_f = (beta - mean * scale)[None, :]          # (1, C_out)
    return w_f.astype(jnp.float32), b_f.astype(jnp.float32)


def make_params(key, c, ci, si, hw, m):
    keys = jax.random.split(key, 12)

    def bn_stats(k, n):
        k1, k2, k3, k4 = jax.random.split(k, 4)
        gamma = 1.0 + 0.1 * jax.random.normal(k1, (n,), jnp.float32)
        beta = 0.1 * jax.random.normal(k2, (n,), jnp.float32)
        mean = 0.1 * jax.random.normal(k3, (n,), jnp.float32)
        var = 1.0 + 0.1 * jax.random.uniform(k4, (n,), jnp.float32)
        return gamma, beta, mean, var

    def conv_bn(kw, kb, cout, cin):
        w = 0.1 * jax.random.normal(kw, (cout, cin), jnp.float32)
        return _fold_bn(w, *bn_stats(kb, cout))

    wt, bt = conv_bn(keys[0], keys[1], ci, c)          # theta_spatial
    wp, bp = conv_bn(keys[2], keys[3], ci, c)          # phi_spatial
    wgx, bgx = conv_bn(keys[4], keys[5], ci, c)        # gx_spatial
    wgg, bgg = conv_bn(keys[6], keys[7], si, 2 * hw)   # gg_spatial, folded (2*HW, Si)
    wgg1, wgg2 = wgg[:hw], wgg[hw:]                    # Gs_in / Gs_out halves
    w1, b1 = conv_bn(keys[8], keys[9], m, 1 + si)      # W_spatial conv #1, (1+Si, M)
    w1g, w1gg = w1[0:1], w1[1:]                        # g_xs channel vs Gs_joint channels
    w2_f, b2 = conv_bn(keys[10], keys[11], 1, m)       # W_spatial conv #2, (M, 1)
    w2row = w2_f.T                                     # store as (1, M)

    return dict(wt=wt, bt=bt, wp=wp, bp=bp, wgx=wgx, bgx=bgx,
                wgg1=wgg1, wgg2=wgg2, bgg=bgg,
                w1g=w1g, w1gg=w1gg, b1=b1, w2=w2row, b2=b2)


# ----------------------------------------------------------------------------
# Small padding / packing helpers
# ----------------------------------------------------------------------------
def _ceil_to(n, a):
    return ((n + a - 1) // a) * a


def _pad2(a, rows, cols):
    """Zero-pad a 2-D f32 matrix to (rows, cols)."""
    r, cc = a.shape
    return jnp.zeros((rows, cols), jnp.float32).at[:r, :cc].set(a)


# ----------------------------------------------------------------------------
# Pallas kernel: one grid step = BB batch elements, layout (channels, lanes)
# ----------------------------------------------------------------------------
def _make_dm_kernel(c, ci, cip, hwp, bb, sip, mp):
    f32, bf16 = jnp.float32, jnp.bfloat16
    # misc slab (width-1 f32) row offsets -- all multiples of 8
    o_bgg, o_b1, o_w1g, o_w2, o_b2 = 0, sip, sip + mp, sip + 2 * mp, sip + 3 * mp
    dn0 = (((0,), (0,)), ((), ()))   # contract dim 0 of both operands (A^T @ B on MXU)

    def kernel(x_ref, wx_ref, ws_ref, misc_ref, out_ref):
        x_aug = x_ref[...]                            # (c+1, n) f32, row c is all-ones
        x = x_aug[:c, :]                              # (c, n)
        xb = x_aug.astype(bf16)

        # fused theta/phi/gx 1x1 convs (+BN folded); biases ride on the ones row
        proj = jnp.maximum(
            jnp.dot(wx_ref[...], xb, preferred_element_type=f32), 0.0)   # (3cip, n)
        tp_bf = proj[:2 * cip, :].astype(bf16)        # [theta; phi], 16-row-aligned cast
        gx = proj[2 * cip:, :]                        # (cip, n) f32

        w_gg1 = ws_ref[0:hwp, :]                      # (hwp, sip) bf16
        w_gg2 = ws_ref[hwp:2 * hwp, :]                # (hwp, sip) bf16
        w_1gg = ws_ref[2 * hwp:2 * hwp + mp, :]       # (mp, sip)  bf16

        # --- relation (Gs) branch, per batch element of the block ---
        #   gg_pre = a1^T @ theta + a2^T @ phi ,  a1 = phi@Wgg1, a2 = theta@Wgg2
        # (no (HW,HW) Gs, no concat, no transpose: dim-0 contractions feed the MXU)
        parts = []
        for bi in range(bb):
            sl = slice(bi * hwp, (bi + 1) * hwp)      # 128-aligned lane slice
            th = tp_bf[:cip, sl]                      # (cip, hwp) bf16
            ph = tp_bf[cip:2 * cip, sl]               # (cip, hwp) bf16
            a1 = jnp.dot(ph, w_gg1, preferred_element_type=f32).astype(bf16)  # (cip,sip)
            a2 = jnp.dot(th, w_gg2, preferred_element_type=f32).astype(bf16)  # (cip,sip)
            parts.append(
                lax.dot_general(a1, th, dn0, preferred_element_type=f32)
                + lax.dot_general(a2, ph, dn0, preferred_element_type=f32))   # (sip,hwp)
        gg_pre = parts[0] if bb == 1 else jnp.concatenate(parts, axis=1)      # (sip, n)
        gg = jnp.maximum(gg_pre + misc_ref[o_bgg:o_bgg + sip, :], 0.0)

        # gx channel mean (padded channel rows are zero; divide by true ci)
        g_mean = jnp.sum(gx, axis=0, keepdims=True) * (1.0 / ci)              # (1, n)

        # --- W_spatial: conv(1+Si -> M)+BN+ReLU, conv(M -> 1)+BN ---
        y1 = jnp.maximum(
            jnp.dot(w_1gg, gg.astype(bf16), preferred_element_type=f32)
            + misc_ref[o_w1g:o_w1g + mp, :] * g_mean
            + misc_ref[o_b1:o_b1 + mp, :], 0.0)                               # (mp, n)
        y2 = (jnp.sum(misc_ref[o_w2:o_w2 + mp, :] * y1, axis=0, keepdims=True)
              + misc_ref[o_b2:o_b2 + 1, :])                                   # (1, n)

        # sigmoid gate broadcast over channels (sublanes); lane-dense store
        out_ref[...] = (jax.nn.sigmoid(y2) * x).astype(out_ref.dtype)

    return kernel


def dm_forward(x_nchw, params, *, lane_target=512):
    b, c, h, w = x_nchw.shape
    hw = h * w
    ci = params['wt'].shape[1]          # inter_channel
    si = params['wgg1'].shape[1]        # inter_spatial
    m = params['w1gg'].shape[1]         # W_spatial hidden width
    assert params['wgg1'].shape[0] == hw, "in_spatial must equal h*w"

    # sublane / lane friendly padded sizes
    hwp = _ceil_to(hw, 128)
    cip = _ceil_to(ci, 8)
    sip = _ceil_to(si, 8)
    mp = _ceil_to(m, 16)

    # batches per grid step: lane-dense blocks (>=128 lanes), but keep >= 2
    # "parallel" grid steps (v7x has 2 TensorCores) whenever B >= 2.
    bb = max(1, min(b, lane_target // hwp))
    while bb > 1 and (b + bb - 1) // bb < 2:
        bb = max(1, bb // 2)
    bpad = _ceil_to(b, bb)
    g = bpad // bb
    n_block = bb * hwp

    # --- activations: (B,C,H,W) -> (C+1, Bpad*HWp), ones row for bias folding ---
    x3 = x_nchw.reshape(b, c, hw).astype(jnp.float32)
    x3 = jnp.pad(x3, ((0, bpad - b), (0, 0), (0, hwp - hw)))
    x_cs = jnp.transpose(x3, (1, 0, 2)).reshape(c, bpad * hwp)
    x_aug = jnp.concatenate([x_cs, jnp.ones((1, bpad * hwp), jnp.float32)], axis=0)

    # --- weight slab 1 (bf16, width C+1): fused theta/phi/gx weights + biases ---
    def proj_block(w_io, b_1o):                       # w_io: (C, Ci) folded
        blk = jnp.zeros((cip, c + 1), jnp.float32)
        blk = blk.at[:ci, :c].set(w_io.T)
        blk = blk.at[:ci, c].set(b_1o[0])
        return blk
    w_x = jnp.concatenate([proj_block(params['wt'], params['bt']),
                           proj_block(params['wp'], params['bp']),
                           proj_block(params['wgx'], params['bgx'])],
                          axis=0).astype(jnp.bfloat16)                 # (3cip, c+1)

    # --- weight slab 2 (bf16, width Si): Wgg1, Wgg2, W1gg ---
    w_s = jnp.concatenate([_pad2(params['wgg1'], hwp, sip),
                           _pad2(params['wgg2'], hwp, sip),
                           _pad2(params['w1gg'].T, mp, sip)],
                          axis=0).astype(jnp.bfloat16)                 # (2hwp+mp, sip)

    # --- misc slab (f32, width 1): per-channel vectors not folded into the MXU ---
    misc = jnp.concatenate([_pad2(params['bgg'].T, sip, 1),
                            _pad2(params['b1'].T, mp, 1),
                            _pad2(params['w1g'].T, mp, 1),
                            _pad2(params['w2'].T, mp, 1),
                            _pad2(params['b2'], 8, 1)], axis=0)        # (sip+3mp+8, 1)

    kernel = _make_dm_kernel(c, ci, cip, hwp, bb, sip, mp)

    flops_blk = (2 * (3 * cip) * (c + 1) * n_block
                 + bb * (4 * cip * hwp * sip + 4 * cip * sip * hwp)
                 + 2 * mp * sip * n_block
                 + 2 * mp * n_block)
    bytes_acc = (x_aug.size + bpad * hwp * c) * 4 + w_x.size * 2 + w_s.size * 2 + misc.size * 4

    grid_spec = pltpu.PrefetchScalarGridSpec(
        num_scalar_prefetch=0,
        grid=(g,),
        in_specs=[
            pl.BlockSpec((c + 1, n_block), lambda i: (0, i)),
            pl.BlockSpec(w_x.shape, lambda i: (0, 0)),     # grid-invariant: DMA'd once
            pl.BlockSpec(w_s.shape, lambda i: (0, 0)),
            pl.BlockSpec(misc.shape, lambda i: (0, 0)),
        ],
        out_specs=pl.BlockSpec((c, n_block), lambda i: (0, i)),
    )

    out_cs = pl.pallas_call(
        kernel,
        out_shape=jax.ShapeDtypeStruct((c, bpad * hwp), jnp.float32),
        grid_spec=grid_spec,
        compiler_params=pltpu.CompilerParams(dimension_semantics=("parallel",)),
        cost_estimate=pl.CostEstimate(flops=int(g * flops_blk),
                                      transcendentals=int(bpad * hwp),
                                      bytes_accessed=int(bytes_acc)),
    )(x_aug, w_x, w_s, misc)

    # (C, Bpad*HWp) -> (B, C, H, W); drop batch / spatial padding
    out = out_cs.reshape(c, bpad, hwp)[:, :b, :hw]
    return jnp.transpose(out, (1, 0, 2)).reshape(b, c, h, w)


# ----------------------------------------------------------------------------
# Pure-JAX f32 reference mirroring the torch NCHW semantics (for validation)
# ----------------------------------------------------------------------------
def dm_reference(x, P):
    b, c, h, w = x.shape
    hw = h * w

    def conv_bias(x_, w_io, bias_1o):  # w_io: (Cin, Cout) folded, bias: (1, Cout)
        return jnp.einsum('bihw,io->bohw', x_, w_io) + bias_1o[0][None, :, None, None]

    theta = jnp.maximum(conv_bias(x, P['wt'], P['bt']), 0.0)
    phi = jnp.maximum(conv_bias(x, P['wp'], P['bp']), 0.0)
    theta = theta.reshape(b, -1, hw).transpose(0, 2, 1)              # (b, HW, Ci)
    phi = phi.reshape(b, -1, hw)                                     # (b, Ci, HW)
    Gs = jnp.einsum('bpi,biq->bpq', theta, phi)                      # (b, HW, HW)
    Gs_in = Gs.transpose(0, 2, 1).reshape(b, hw, h, w)
    Gs_out = Gs.reshape(b, hw, h, w)
    Gs_joint = jnp.concatenate([Gs_in, Gs_out], axis=1)
    wgg_full = jnp.concatenate([P['wgg1'], P['wgg2']], axis=0)
    gg = jnp.maximum(conv_bias(Gs_joint, wgg_full, P['bgg']), 0.0)
    gx = jnp.maximum(conv_bias(x, P['wgx'], P['bgx']), 0.0)
    g_mean = jnp.mean(gx, axis=1, keepdims=True)
    ys = jnp.concatenate([g_mean, gg], axis=1)
    w1_full = jnp.concatenate([P['w1g'], P['w1gg']], axis=0)
    y1 = jnp.maximum(conv_bias(ys, w1_full, P['b1']), 0.0)
    y2 = jnp.einsum('bihw,oi->bohw', y1, P['w2']) + P['b2'][0][None, :, None, None]
    return jax.nn.sigmoid(y2) * x


if __name__ == "__main__":
    key = jax.random.PRNGKey(0)
    kx, kp = jax.random.split(key)

    # Small shapes consistent with the module: DM_Module(in_channel=16,
    # in_spatial=h*w=64, cha_ratio=2, spa_ratio=2, down_ratio=1)
    b, c, h, w = 2, 16, 8, 8
    cha_ratio, spa_ratio, down_ratio = 2, 2, 1
    in_spatial = h * w                    # forward requires in_spatial == h*w
    ci = c // cha_ratio                   # inter_channel
    si = in_spatial // spa_ratio          # inter_spatial
    m = (1 + si) // down_ratio            # hidden width of W_spatial

    x = jax.random.normal(kx, (b, c, h, w), jnp.float32)
    params = make_params(kp, c, ci, si, h * w, m)

    out = jax.block_until_ready(jax.jit(dm_forward)(x, params))
    ref = dm_reference(x, params)
    assert out.shape == x.shape

    # bf16 MXU inputs (f32 accumulation) vs the f32 reference: typical max-abs
    # error is a few 1e-3; bounds tightened vs the previous 5e-2 and a relative
    # check added so real regressions are not hidden.
    err_abs = float(jnp.max(jnp.abs(out - ref)))
    err_rel = float(jnp.linalg.norm(out - ref) / (jnp.linalg.norm(ref) + 1e-12))
    assert err_abs < 3e-2, f"max abs error too large: {err_abs}"
    assert err_rel < 2e-2, f"relative L2 error too large: {err_rel}"

    print("KERNEL_OK")
</pallas_src>

<mosaic_0001>
module attributes {stable_mosaic.version = 11 : i64} {
  func.func @kernel(%arg0: i32, %arg1: memref<17x128xf32, #tpu.memory_space<vmem>>, %arg2: memref<24x17xbf16, #tpu.memory_space<vmem>>, %arg3: memref<304x32xbf16, #tpu.memory_space<vmem>>, %arg4: memref<184x1xf32, #tpu.memory_space<vmem>>, %arg5: memref<16x128xf32, #tpu.memory_space<vmem>>) attributes {dimension_semantics = [#tpu.dimension_semantics<parallel>], iteration_bounds = array<i64: 2>, scalar_prefetch = 0 : i64, scratch_operands = 0 : i64, tpu.core_type = #tpu.core_type<tc>, window_params = [{transform_indices = @transform_0, window_bounds = array<i64: 17, 128>}, {pipeline_mode = #tpu.pipeline_mode<synchronous>, transform_indices = @transform_1, window_bounds = array<i64: 24, 17>}, {pipeline_mode = #tpu.pipeline_mode<synchronous>, transform_indices = @transform_2, window_bounds = array<i64: 304, 32>}, {pipeline_mode = #tpu.pipeline_mode<synchronous>, transform_indices = @transform_3, window_bounds = array<i64: 184, 1>}, {transform_indices = @transform_4, window_bounds = array<i64: 16, 128>}]} {
    %c0 = arith.constant 0 : index
    %c0_0 = arith.constant 0 : index
    %0 = vector.load %arg1[%c0, %c0_0] : memref<17x128xf32, #tpu.memory_space<vmem>>, vector<17x128xf32>
    %1 = vector.extract_strided_slice %0 {offsets = [0, 0], sizes = [16, 128], strides = [1, 1]} : vector<17x128xf32> to vector<16x128xf32>
    %2 = arith.truncf %0 : vector<17x128xf32> to vector<17x128xbf16>
    %c0_1 = arith.constant 0 : index
    %c0_2 = arith.constant 0 : index
    %3 = vector.load %arg2[%c0_1, %c0_2] : memref<24x17xbf16, #tpu.memory_space<vmem>>, vector<24x17xbf16>
    %cst = arith.constant dense<0.000000e+00> : vector<24x128xf32>
    %4 = tpu.matmul %3, %2, %cst {dimension_numbers = #tpu.dot_dimension_numbers<[1], [0], [0], [1], [0, 0, 1, 1], [], []>} : vector<24x17xbf16>, vector<17x128xbf16>, vector<24x128xf32> -> vector<24x128xf32>
    %cst_3 = arith.constant 0.000000e+00 : f32
    %5 = vector.broadcast %cst_3 : f32 to vector<24x128xf32>
    %6 = arith.maximumf %4, %5 : vector<24x128xf32>
    %7 = vector.extract_strided_slice %6 {offsets = [0, 0], sizes = [16, 128], strides = [1, 1]} : vector<24x128xf32> to vector<16x128xf32>
    %8 = arith.truncf %7 : vector<16x128xf32> to vector<16x128xbf16>
    %9 = vector.extract_strided_slice %6 {offsets = [16, 0], sizes = [8, 128], strides = [1, 1]} : vector<24x128xf32> to vector<8x128xf32>
    %c0_4 = arith.constant 0 : index
    %c0_5 = arith.constant 0 : index
    %10 = vector.load %arg3[%c0_4, %c0_5] : memref<304x32xbf16, #tpu.memory_space<vmem>>, vector<128x32xbf16>
    %c128 = arith.constant 128 : index
    %c0_6 = arith.constant 0 : index
    %11 = vector.load %arg3[%c128, %c0_6] : memref<304x32xbf16, #tpu.memory_space<vmem>>, vector<128x32xbf16>
    %c256 = arith.constant 256 : index
    %c0_7 = arith.constant 0 : index
    %12 = vector.load %arg3[%c256, %c0_7] : memref<304x32xbf16, #tpu.memory_space<vmem>>, vector<48x32xbf16>
    %13 = vector.extract_strided_slice %8 {offsets = [0, 0], sizes = [8, 128], strides = [1, 1]} : vector<16x128xbf16> to vector<8x128xbf16>
    %14 = vector.extract_strided_slice %8 {offsets = [8, 0], sizes = [8, 128], strides = [1, 1]} : vector<16x128xbf16> to vector<8x128xbf16>
    %cst_8 = arith.constant dense<0.000000e+00> : vector<8x32xf32>
    %15 = tpu.matmul %14, %10, %cst_8 {dimension_numbers = #tpu.dot_dimension_numbers<[1], [0], [0], [1], [0, 0, 1, 1], [], []>} : vector<8x128xbf16>, vector<128x32xbf16>, vector<8x32xf32> -> vector<8x32xf32>
    %16 = arith.truncf %15 : vector<8x32xf32> to vector<8x32xbf16>
    %cst_9 = arith.constant dense<0.000000e+00> : vector<8x32xf32>
    %17 = tpu.matmul %13, %11, %cst_9 {dimension_numbers = #tpu.dot_dimension_numbers<[1], [0], [0], [1], [0, 0, 1, 1], [], []>} : vector<8x128xbf16>, vector<128x32xbf16>, vector<8x32xf32> -> vector<8x32xf32>
    %18 = arith.truncf %17 : vector<8x32xf32> to vector<8x32xbf16>
    %cst_10 = arith.constant dense<0.000000e+00> : vector<32x128xf32>
    %19 = tpu.matmul %16, %13, %cst_10 {dimension_numbers = #tpu.dot_dimension_numbers<[0], [0], [1], [1], [0, 1, 1, 1], [], []>} : vector<8x32xbf16>, vector<8x128xbf16>, vector<32x128xf32> -> vector<32x128xf32>
    %cst_11 = arith.constant dense<0.000000e+00> : vector<32x128xf32>
    %20 = tpu.matmul %18, %14, %cst_11 {dimension_numbers = #tpu.dot_dimension_numbers<[0], [0], [1], [1], [0, 1, 1, 1], [], []>} : vector<8x32xbf16>, vector<8x128xbf16>, vector<32x128xf32> -> vector<32x128xf32>
    %21 = arith.addf %19, %20 : vector<32x128xf32>
    %c0_12 = arith.constant 0 : index
    %c0_13 = arith.constant 0 : index
    %22 = vector.load %arg4[%c0_12, %c0_13] : memref<184x1xf32, #tpu.memory_space<vmem>>, vector<32x1xf32>
    %23 = vector.broadcast %22 : vector<32x1xf32> to vector<32x128xf32>
    %24 = arith.addf %21, %23 : vector<32x128xf32>
    %cst_14 = arith.constant 0.000000e+00 : f32
    %25 = vector.broadcast %cst_14 : f32 to vector<32x128xf32>
    %26 = arith.maximumf %24, %25 : vector<32x128xf32>
    %cst_15 = arith.constant dense<0.000000e+00> : vector<128xf32>
    %27 = vector.multi_reduction <add>, %9, %cst_15 [0] : vector<8x128xf32> to vector<128xf32>
    %28 = vector.shape_cast %27 : vector<128xf32> to vector<1x128xf32>
    %cst_16 = arith.constant 1.250000e-01 : f32
    %29 = vector.broadcast %cst_16 : f32 to vector<1x128xf32>
    %30 = arith.mulf %28, %29 : vector<1x128xf32>
    %31 = arith.truncf %26 : vector<32x128xf32> to vector<32x128xbf16>
    %cst_17 = arith.constant dense<0.000000e+00> : vector<48x128xf32>
    %32 = tpu.matmul %12, %31, %cst_17 {dimension_numbers = #tpu.dot_dimension_numbers<[1], [0], [0], [1], [0, 0, 1, 1], [], []>} : vector<48x32xbf16>, vector<32x128xbf16>, vector<48x128xf32> -> vector<48x128xf32>
    %c80 = arith.constant 80 : index
    %c0_18 = arith.constant 0 : index
    %33 = vector.load %arg4[%c80, %c0_18] : memref<184x1xf32, #tpu.memory_space<vmem>>, vector<48x1xf32>
    %34 = vector.broadcast %33 : vector<48x1xf32> to vector<48x128xf32>
    %35 = vector.broadcast %30 : vector<1x128xf32> to vector<48x128xf32>
    %36 = arith.mulf %34, %35 : vector<48x128xf32>
    %37 = arith.addf %32, %36 : vector<48x128xf32>
    %c32 = arith.constant 32 : index
    %c0_19 = arith.constant 0 : index
    %38 = vector.load %arg4[%c32, %c0_19] : memref<184x1xf32, #tpu.memory_space<vmem>>, vector<48x1xf32>
    %39 = vector.broadcast %38 : vector<48x1xf32> to vector<48x128xf32>
    %40 = arith.addf %37, %39 : vector<48x128xf32>
    %cst_20 = arith.constant 0.000000e+00 : f32
    %41 = vector.broadcast %cst_20 : f32 to vector<48x128xf32>
    %42 = arith.maximumf %40, %41 : vector<48x128xf32>
    %c128_21 = arith.constant 128 : index
    %c0_22 = arith.constant 0 : index
    %43 = vector.load %arg4[%c128_21, %c0_22] : memref<184x1xf32, #tpu.memory_space<vmem>>, vector<48x1xf32>
    %44 = vector.broadcast %43 : vector<48x1xf32> to vector<48x128xf32>
    %45 = arith.mulf %44, %42 : vector<48x128xf32>
    %cst_23 = arith.constant dense<0.000000e+00> : vector<128xf32>
    %46 = vector.multi_reduction <add>, %45, %cst_23 [0] : vector<48x128xf32> to vector<128xf32>
    %47 = vector.shape_cast %46 : vector<128xf32> to vector<1x128xf32>
    %c176 = arith.constant 176 : index
    %c0_24 = arith.constant 0 : index
    %48 = vector.load %arg4[%c176, %c0_24] : memref<184x1xf32, #tpu.memory_space<vmem>>, vector<1x1xf32>
    %49 = vector.broadcast %48 : vector<1x1xf32> to vector<1x128xf32>
    %50 = arith.addf %47, %49 : vector<1x128xf32>
    %51 = arith.negf %50 : vector<1x128xf32>
    %52 = math.exp %51 : vector<1x128xf32>
    %cst_25 = arith.constant 1.000000e+00 : f32
    %53 = vector.broadcast %cst_25 : f32 to vector<1x128xf32>
    %54 = arith.addf %53, %52 : vector<1x128xf32>
    %55 = arith.divf %53, %54 : vector<1x128xf32>
    %56 = vector.broadcast %55 : vector<1x128xf32> to vector<16x128xf32>
    %57 = arith.mulf %56, %1 : vector<16x128xf32>
    %c0_26 = arith.constant 0 : index
    %c0_27 = arith.constant 0 : index
    %58 = vector.load %arg5[%c0_26, %c0_27] : memref<16x128xf32, #tpu.memory_space<vmem>>, vector<16x128xf32>
    tpu.vector_store %arg5[%c0_26, %c0_27], %57 {strides = array<i32>} : memref<16x128xf32, #tpu.memory_space<vmem>>, vector<16x128xf32>,
    return
  }
  func.func @transform_0(%arg0: i32) -> (i32, i32) {
    %c0_i32 = arith.constant 0 : i32
    %c0_i32_0 = arith.constant 0 : i32
    return %c0_i32, %arg0 : i32, i32
  }
  func.func @transform_1(%arg0: i32) -> (i32, i32) {
    %c0_i32 = arith.constant 0 : i32
    %c0_i32_0 = arith.constant 0 : i32
    %c0_i32_1 = arith.constant 0 : i32
    return %c0_i32, %c0_i32_0 : i32, i32
  }
  func.func @transform_2(%arg0: i32) -> (i32, i32) {
    %c0_i32 = arith.constant 0 : i32
    %c0_i32_0 = arith.constant 0 : i32
    %c0_i32_1 = arith.constant 0 : i32
    return %c0_i32, %c0_i32_0 : i32, i32
  }
  func.func @transform_3(%arg0: i32) -> (i32, i32) {
    %c0_i32 = arith.constant 0 : i32
    %c0_i32_0 = arith.constant 0 : i32
    %c0_i32_1 = arith.constant 0 : i32
    return %c0_i32, %c0_i32_0 : i32, i32
  }
  func.func @transform_4(%arg0: i32) -> (i32, i32) {
    %c0_i32 = arith.constant 0 : i32
    %c0_i32_0 = arith.constant 0 : i32
    return %c0_i32, %arg0 : i32, i32
  }
}

</mosaic_0001>

<bundles_post_ra>
// kernel: dm_forward.1
= control target key start
LH: loop header
LB: loop body
LE: loop exit
PB: predicated region body
PF: predicated region fallthrough
CT: control target
= control target key end

     0   :  { %s1338_s15 = smov 0   ;;  %s1340_s16 = smov 0   ;;  %s1578_s0 = inlined_call_operand.vmem [shape: f32[17,256], index: 0, kind: input, shape index: {}]   ;;  %s1579_s1 = inlined_call_operand.vmem [shape: bf16[24,17], index: 1, kind: input, shape index: {}]   ;;  %s1580_s2 = inlined_call_operand.vmem [shape: bf16[304,32], index: 2, kind: input, shape index: {}]   ;;  %s1581_s3 = inlined_call_operand.vmem [shape: f32[184,1], index: 3, kind: input, shape index: {}]   ;;  %s1582_s4 = inlined_call_operand.vmem [shape: f32[16,256], index: 4, kind: output, shape index: {}]  }
   0x1   :  { %s1342_s17 = smov 0  }
   0x2 LB: > { %s1073_s18 = sadd.s32 4294967295, %s1308_s17   ;;  %s1355_s19 = sadd.s32 1, %s1308_s17   ;;  %s1308_s17 = sphi %s1342_s17, %s1586_s17   ;;  %s1304_s16 = sphi %s1340_s16, %s1585_s16   ;;  %s1300_s15 = sphi %s1338_s15, %s1584_s15  }
   0x3   : > { %s18_s20 = ssub.s32 %s1308_s17, %s1355_s19  ;;  %s21_s21 = sadd.s32 1, %s1304_s16 }
   0x4   : > { %p19_p0 = scmp.eq.s32.totalorder %s18_s20, 0  ;;  %p28_p1 = scmp.ne.s32.totalorder %s1304_s16, %s1300_s15 }
   0x5   : > { %p29_p2 = scmp.eq.s32.totalorder %s1308_s17, 0  ;;  %p121_p3 = scmp.eq.s32.totalorder %s1073_s18, 1 }
   0x6   : > { %s1366_s22 = scalar_select %p19_p0, %s1304_s16, %s21_s21  }
   0x7   : > { %p30_p4 = por %p29_p2, %p28_p1  ;;  %p1368_p5 = por %p121_p3, %p28_p1 }
   0x8   : > { %p1076_p6 = scmp.ge.s32.totalorder %s1308_s17, 2 }
   0xa   : > { %152 = sbr.rel (%p1076_p6) target bundleno = 24 (0x18), region = 28 }
  0x11   : > { %155 = sbr.rel (!%p30_p4) target bundleno = 24 (0x18), region = 32  ;;  %s157_s24 = sand.u32 (%p30_p4), 1, %s1304_s16  }
  0x12   : > { %s1077_s25 = sshll.u32 (%p30_p4), %s1308_s17, 3  ;;  %s1230_s26 = smul.u32 (%p30_p4), 24, %s157_s24 }
  0x13   : > { %s161_s29 = scalar_lea.vmem (%p30_p4), %s1578_s0, %s1077_s25 }
  0x14   : > { %v193_v0 = vld [vmem:[%s161_s29] sm:$0xff] (%p30_p4)  ;;  %v195_v1 = vld [vmem:[%s161_s29 + $0x10] sm:$0xff] (%p30_p4)  ;;  %s159_s30 = scalar_lea.vmem (%p30_p4), [#allocation2], %s1230_s26 }
  0x15   : > { %v197_v2 = vld [vmem:[%s161_s29 + $0x20] sm:$0xff] (%p30_p4)  ;;  %194 = vst [vmem:[%s159_s30] sm:$0xff] (%p30_p4), %v193_v0  ;;  %196 = vst [vmem:[%s159_s30 + $0x8] sm:$0xff] (%p30_p4), %v195_v1 }
  0x16   : > { %198 = vst [vmem:[%s159_s30 + $0x10] sm:$0xff] (%p30_p4), %v197_v2 }
  0x18 PF: > { %p1078_p7 = scmp.ge.s32.totalorder %s1308_s17, 1  ;;  %p203_p8 = scmp.lt.s32.totalorder %s1308_s17, 3 }
  0x1a   : > { %p204_p9 = pnand %p1078_p7, %p203_p8 }
  0x1b   : > { %s210_s5 = sand.u32 (!%p204_p9), 1, %s1300_s15   ;;  %v1261_v3 = vld [vmem:[%s1579_s1] sm:$0xff] (!%p204_p9)   ;;  %vm258_vm0 = vcmask (!%p204_p9), 1040384   ;;  %vm251_vm1 = vcmask (!%p204_p9), 138240   ;;  %v1310_v4 = vmov (!%p204_p9), 0   ;;  %v686_v6 = vld [vmem:[%s1581_s3 + $0x8] sm:$0xff] (!%p204_p9) }
  0x1c   : > { %207 = sbr.rel (%p204_p9) target bundleno = 1116 (0x45c), region = 70  ;;  %1259 = vset.pattern.permute.xlu1 (!%p204_p9), %v1310_v4  ;;  %1152 = vmatprep.mubr.msk.bf16.mxu1 (!%p204_p9), %vm251_vm1, %v1261_v3  ;;  %v685_v5 = vld [vmem:[%s1581_s3] sm:$0xff] (!%p204_p9)  ;;  %v260_v10 = vsel (!%p204_p9), %vm258_vm0, 65535, %v1310_v4  ;;  %v1311_v11 = vmov (!%p204_p9), 0.0   ;;  %v687_v16 = vld [vmem:[%s1581_s3 + $0x10] sm:$0xff] (!%p204_p9)  ;;  %v1265_v17 = vld [vmem:[%s1580_s2 + $0x48] sm:$0xff] (!%p204_p9)  }
  0x1d   : > { %s1231_s8 = smul.u32 (!%p204_p9), 24, %s210_s5  ;;  %691 = vperm.xlu1 (!%p204_p9), %1259, %v685_v5   ;;  %1176 = vmatprep.subr.bf16.mxu0 (!%p204_p9), %v1311_v11  ;;  %v1263_v15 = vld [vmem:[%s1580_s2 + $0x40] sm:$0xff] (!%p204_p9)   ;;  %v1262_v18 = vld [vmem:[%s1579_s1 + $0x8] ss:$0 sps:$4 sm:$0xff] (!%p204_p9)   ;;  %v726_v19 = vld [vmem:[%s1581_s3 + $0x50] sm:$0xff] (!%p204_p9)  ;;  %vm1312_vm2 = vmmov (!%p204_p9), 0  }
  0x1e   : > { %1177 = vmatpush3.bf16.msra.mxu0 (!%p204_p9), %v1263_v15  ;;  %v1264_v20 = vld [vmem:[%s1580_s2] sm:$0xff] (!%p204_p9)   ;;  %v1267_v21 = vld [vmem:[%s1580_s2 + $0x50] sm:$0xff] (!%p204_p9)   ;;  %v727_v22 = vld [vmem:[%s1581_s3 + $0x58] sm:$0xff] (!%p204_p9)  ;;  %1192 = vmatprep.mubr.msk.bf16.mxu0 (!%p204_p9), %vm1312_vm2, %v1311_v11  ;;  %vm558_vm3 = vcmask (!%p204_p9), 1043456   ;;  %vm551_vm4 = vcmask (!%p204_p9), 64512   ;;  %vm783_vm5 = vcmask (!%p204_p9), 261120  }
  0x1f   : > { %s212_s13 = scalar_lea.vmem (!%p204_p9), [#allocation2], %s1231_s8  ;;  %1178 = vmatprep.subr.bf16.mxu0 (!%p204_p9), %v1311_v11  ;;  %v1266_v23 = vld [vmem:[%s1580_s2 + $0x8] sm:$0xff] (!%p204_p9)   ;;  %v1269_v24 = vld [vmem:[%s1580_s2 + $0x58] sm:$0xff] (!%p204_p9)   ;;  %v728_v25 = vld [vmem:[%s1581_s3 + $0x60] sm:$0xff] (!%p204_p9)  ;;  %s1079_s6 = sshll.u32 (!%p204_p9), %s210_s5, 4 }
  0x20   : > { %v1394_v7 = vld [vmem:[%s212_s13] sm:$0xff] (!%p204_p9)  ;;  %v1396_v8 = vld [vmem:[%s212_s13 + $0x8] sm:$0xff] (!%p204_p9)  ;;  %v237_v9 = vld [vmem:[%s212_s13 + $0x10] sm:$0x1] (!%p204_p9)  ;;  %s233_s7 = scalar_lea.vmem (!%p204_p9), [#allocation3], %s1079_s6 }
  0x21   : > { %v238_v12 = vpack.c.bf16 (!%p204_p9), %v1396_v8, %v1394_v7  ;;  %v239_v13 = vpack.c.bf16 (!%p204_p9), %v237_v9, %v237_v9  ;;  %696 = vperm.xlu1 (!%p204_p9), %1259, %v686_v6   ;;  %v1268_v26 = vld [vmem:[%s1580_s2 + $0x10] sm:$0xff] (!%p204_p9)   ;;  %v1271_v27 = vld [vmem:[%s1580_s2 + $0x60] sm:$0xff] (!%p204_p9)   ;;  %v1270_v29 = vld [vmem:[%s1580_s2 + $0x18] sm:$0xff] (!%p204_p9)  }
  0x22   : > { %1179 = vmatpush3.bf16.msra.mxu0 (!%p204_p9), %v1265_v17  ;;  %v850_v28 = vld [vmem:[%s1581_s3 + $0x20] sm:$0xff] (!%p204_p9)  ;;  %v1273_v30 = vld [vmem:[%s1580_s2 + $0x68] sm:$0xff] (!%p204_p9)   ;;  %v730_v31 = vld [vmem:[%s1581_s3 + $0x70] sm:$0xff] (!%p204_p9) }
  0x23   : > { %1148 = vmatprep.subr.bf16.mxu1 %v238_v12  ;;  %v262_v14 = vand.u32 %v260_v10, %v239_v13  ;;  %1180 = vmatprep.subr.bf16.mxu0 %v1311_v11  ;;  %v1272_v32 = vld [vmem:[%s1580_s2 + $0x20] sm:$0xff]   ;;  %v731_v33 = vld [vmem:[%s1581_s3 + $0x78] sm:$0xff]  ;;  %v1274_v34 = vld [vmem:[%s1580_s2 + $0x28] sm:$0xff]   ;;  %s1112_s8 = sshll.u32 (%p1368_p5), %s1073_s18, 3 }
  0x24   : > { %1149 = vmatpush3.bf16.msra.mxu1 %v238_v12  ;;  %v1275_v35 = vld [vmem:[%s1580_s2 + $0x70] sm:$0xff]   ;;  %v1277_v37 = vld [vmem:[%s1580_s2 + $0x78] sm:$0xff]   ;;  %v729_v60 = vld [vmem:[%s1581_s3 + $0x68] sm:$0xff]  ;;  %s980_s5 = scalar_lea.vmem (%p1368_p5), %s1582_s4, %s1112_s8 }
  0x25   : > { %1150 = vmatprep.subr.bf16.mxu1 %v262_v14  ;;  %701 = vperm.xlu1 %1259, %v687_v16   ;;  %v1276_v36 = vld [vmem:[%s1580_s2 + $0x30] sm:$0xff]   ;;  %v1278_v38 = vld [vmem:[%s1580_s2 + $0x38] sm:$0xff]   ;;  %v898_v61 = vld [vmem:[%s1581_s3 + $0x80] sm:$0xff] }
  0x26   : > { %1181 = vmatpush3.bf16.msra.mxu0 %v1267_v21  ;;  %v688_v59 = vld [vmem:[%s1581_s3 + $0x18] sm:$0xff]  ;;  %v851_v62 = vld [vmem:[%s1581_s3 + $0x28] sm:$0xff]  ;;  %v854_v63 = vld [vmem:[%s1581_s3 + $0x40] sm:$0xff] }
  0x27   : > { %1182 = vmatprep.subr.bf16.mxu0 %v1311_v11  ;;  %v852_v0 = vld [vmem:[%s1581_s3 + $0x30] sm:$0xff]  ;;  %v855_v1 = vld [vmem:[%s1581_s3 + $0x48] sm:$0xff]  ;;  %v853_v2 = vld [vmem:[%s1581_s3 + $0x38] sm:$0xff] }
  0x28   : > { %1151 = vmatpush3.bf16.msra.mxu1 %v262_v14  ;;  %v902_v3 = vld [vmem:[%s1581_s3 + $0xa0] sm:$0xff]  ;;  %v951_v5 = vld [vmem:[%s1581_s3 + $0xb0] sm:$0x1]  ;;  %v901_v9 = vld [vmem:[%s1581_s3 + $0x98] sm:$0xff] }
  0x29   : > { %1156 = vmatprep.subr.bf16.mxu1 %v1311_v11  ;;  %734 = vperm.xlu1 %1259, %v726_v19   ;;  %v900_v6 = vld [vmem:[%s1581_s3 + $0x90] sm:$0xff]  ;;  %v903_v10 = vld [vmem:[%s1581_s3 + $0xa8] sm:$0xff] }
  0x2a   : > { %1183 = vmatpush3.bf16.msra.mxu0 %v1269_v24 }
  0x2b   : > { %1153 = vmatmul.mubr.msk.bf16.vlgmr.msra.gmra.mrb[0].mxu1 %vm251_vm1, %v1262_v18  ;;  %1184 = vmatprep.subr.bf16.mxu0 %v1311_v11 }
  0x2c   : > { %1157 = vmatpush3.bf16.msra.mxu1 %v1264_v20  ;;  %1172 = vmatprep.mubr.msk.bf16.mxu1 %vm1312_vm2, %v1311_v11 }
  0x2d   : > { %1158 = vmatprep.subr.bf16.mxu1 %v1311_v11  ;;  %739 = vperm.xlu1 %1259, %v727_v22  }
  0x2e   : > { %1185 = vmatpush3.bf16.msra.mxu0 %v1271_v27 }
  0x2f   : > { %1186 = vmatprep.subr.bf16.mxu0 %v1311_v11 }
  0x30   : > { %1159 = vmatpush3.bf16.msra.mxu1 %v1266_v23 }
  0x31   : > { %1160 = vmatprep.subr.bf16.mxu1 %v1311_v11  ;;  %744 = vperm.xlu1 %1259, %v728_v25  }
  0x32   : > { %1187 = vmatpush3.bf16.msra.mxu0 %v1273_v30 }
  0x33   : > { %1188 = vmatprep.subr.bf16.mxu0 %v1311_v11 }
  0x34   : > { %1161 = vmatpush3.bf16.msra.mxu1 %v1268_v26 }
  0x35   : > { %1162 = vmatprep.subr.bf16.mxu1 %v1311_v11  ;;  %858 = vperm.xlu1 %1259, %v850_v28  }
  0x36   : > { %1189 = vmatpush3.bf16.msra.mxu0 %v1275_v35  ;;  %v1280_v35 = vld [vmem:[%s1580_s2 + $0x88] sm:$0xff]  }
  0x37   : > { %1190 = vmatprep.subr.bf16.mxu0 %v1311_v11 }
  0x38   : > { %1163 = vmatpush3.bf16.msra.mxu1 %v1270_v29 }
  0x39   : > { %1164 = vmatprep.subr.bf16.mxu1 %v1311_v11  ;;  %754 = vperm.xlu1 %1259, %v730_v31  }
  0x3a   : > { %1191 = vmatpush3.bf16.msra.mxu0 %v1277_v37 }
  0x3b   : > { %1208 = vmatprep.subr.bf16.mxu0 %v1311_v11 }
  0x3c   : > { %1165 = vmatpush3.bf16.msra.mxu1 %v1272_v32 }
  0x3d   : > { %1166 = vmatprep.subr.bf16.mxu1 %v1311_v11  ;;  %759 = vperm.xlu1 %1259, %v731_v33  }
  0x40   : > { %1167 = vmatpush3.bf16.msra.mxu1 %v1274_v34  ;;  %v1279_v34 = vld [vmem:[%s1580_s2 + $0x80] sm:$0xff]  }
  0x41   : > { %1168 = vmatprep.subr.bf16.mxu1 %v1311_v11  ;;  %906 = vperm.xlu1 %1259, %v898_v61  }
  0x44   : > { %1169 = vmatpush3.bf16.msra.mxu1 %v1276_v36  ;;  %v1281_v36 = vld [vmem:[%s1580_s2 + $0x90] sm:$0xff]  }
  0x45   : > { %1170 = vmatprep.subr.bf16.mxu1 %v1311_v11  ;;  %878 = vperm.xlu1 %1259, %v854_v63  }
  0x48   : > { %1171 = vmatpush3.bf16.msra.mxu1 %v1278_v38 }
  0x49   : > { %883 = vperm.xlu1 %1259, %v855_v1  }
  0x4d   : > { %926 = vperm.xlu1 %1259, %v902_v3  }
  0x51   : > { %954 = vperm.xlu1 %1259, %v951_v5  }
  0x9c   : > { %v692_v16 = vpop.permute.xlu1 %691 }
  0xa0   : > { %v697_v17 = vpop.permute.xlu1 %696 }
  0xa4   : > { %v702_v18 = vpop.permute.xlu1 %701 }
  0xa8   : > { %v735_v38 = vpop.permute.xlu1 %734 }
  0xfe   : > { %v1495_v39 = vpop.f32.mrb[0].mxu1 }
  0xff   : > { %v298_v40 = vpop.f32.mrb[1].mxu1  ;;  %v314_v37 = vmax.f32 %v1495_v39, 0.0 }
 0x100   : > { %v1155_v41 = vpop.f32.mrb[2].mxu1  ;;  %v312_v43 = vmax.f32 %v298_v40, 0.0 }
 0x101   : > { %v301_v42 = vpop.f32.mrb[3].mxu1  ;;  %v717_v40 = vrot.slane %v314_v37, 4  ;;  %v740_v41 = vpop.permute.xlu1 %739 }
 0x102   : > { %v313_v44 = vmax.f32 %v301_v42, 0.0 }
 0x103   : > { %v718_v42 = vadd.f32 %v717_v40, %v314_v37 }
 0x104   : > { %v315_v45 = vpack.c.bf16 %v313_v44, %v312_v43 }
 0x105   : > { %v719_v43 = vrot.slane %v718_v42, 2  ;;  %v745_v44 = vpop.permute.xlu1 %744 }
 0x106   : > { %1193 = vmatmul.mubr.bf16.vlgmr.msra.gmra.mrb[0].mxu0 %v315_v45  ;;  %v355_v46 = vrot.slane %v315_v45, 4  ;;  %v634_v47 = vsel %vm558_vm3, %v315_v45, 0 }
 0x107   : > { %1212 = vmatprep.mubr.msk.bf16.mxu0 %vm1312_vm2, %v1311_v11 }
 0x108   : > { %1173 = vmatmul.mubr.bf16.vlgmr.msra.gmra.mrb[4].mxu1 %v355_v46  ;;  %1228 = vmatprep.subr.msk.bf16.mxu1 %vm558_vm3, %v355_v46  ;;  %v560_v48 = vsel %vm558_vm3, %v355_v46, 0  ;;  %v720_v46 = vadd.f32 %v719_v43, %v718_v42 }
 0x109   : > { %1197 = vmatpush3.bf16.msra.mxu1 %v560_v48 }
 0x10a   : > { %1229 = vmatprep.subr.msk.bf16.mxu1 %vm558_vm3, %v315_v45  ;;  %v721_v48 = vrot.slane %v720_v46, 1 }
 0x1d9   : > { %v528_v49 = vpop.f32.mrb[0].mxu0 }
 0x1da   : > { %v1194_v50 = vpop.f32.mrb[1].mxu0  ;;  %v534_v51 = vpack.c.bf16 %v528_v49, %v528_v49  ;;  %v859_v49 = vpop.permute.xlu1 %858 }
 0x1db   : > { %v439_v52 = vpop.f32.mrb[4].mxu1  ;;  %v531_v53 = vpop.f32.mrb[2].mxu0  ;;  %v722_v50 = vadd.f32 %v721_v48, %v720_v46 }
 0x1dc   : > { %535 = vxpose.xlu0.c.b16.start.end [1/1] (short) (narrow) %v534_v51, 32  ;;  %v1174_v54 = vpop.f32.mrb[5].mxu1  ;;  %v1195_v55 = vpop.f32.mrb[3].mxu0  ;;  %v445_v58 = vpack.c.bf16 %v439_v52, %v439_v52 }
 0x1dd   : > { %v442_v56 = vpop.f32.mrb[6].mxu1  ;;  %v723_v52 = vmul.f32 0.125, %v722_v50 }
 0x1de   : > { %v1175_v57 = vpop.f32.mrb[7].mxu1  ;;  %v755_v51 = vpop.permute.xlu1 %754 }
 0x1df   : > { %v762_v55 = vmul.f32 %v735_v38, %v723_v52  ;;  %v764_v3 = vmul.f32 %v745_v44, %v723_v52 }
 0x1e1   : > { %611 = vxpose.xlu0.c.b16.start.end [1/1] (short) (narrow) %v445_v58, 32  ;;  %v763_v58 = vmul.f32 %v740_v41, %v723_v52 }
 0x1e2   : > { %v760_v54 = vpop.permute.xlu1 %759 }
 0x1ea   : > { %1260 = vset.pattern.permute.xlu0 %v1310_v4  ;;  %v899_v4 = vld [vmem:[%s1581_s3 + $0x88] sm:$0xff] }
 0x1ee   : > { %706 = vperm.xlu0 %1260, %v688_v59  }
 0x1f2   : > { %749 = vperm.xlu0 %1260, %v729_v60   ;;  %v907_v60 = vpop.permute.xlu1 %906 }
 0x1f6   : > { %863 = vperm.xlu0 %1260, %v851_v62  }
 0x1fa   : > { %868 = vperm.xlu0 %1260, %v852_v0  }
 0x1fe   : > { %873 = vperm.xlu0 %1260, %v853_v2  }
 0x202   : > { %911 = vperm.xlu0 %1260, %v899_v4  }
 0x206   : > { %916 = vperm.xlu0 %1260, %v900_v6  }
 0x20a   : > { %921 = vperm.xlu0 %1260, %v901_v9   ;;  %v879_v9 = vpop.permute.xlu1 %878 }
 0x20e   : > { %931 = vperm.xlu0 %1260, %v903_v10  }
 0x242   : > { %v543_v12 = vpop.trf.xlu0 }
 0x243   : > { %1198 = vmatprep.mubr.msk.bf16.mxu1 %vm551_vm4, %v543_v12 }
 0x246   : > { %v544_v13 = vpop.trf.xlu0 }
 0x247   : > { %1199 = vmatmul.mubr.msk.bf16.vlgmr.msra.gmra.mrb[8].mxu1 %vm551_vm4, %v544_v13 }
 0x248   : > { %1203 = vmatpush3.bf16.msra.mxu1 %v634_v47 }
 0x24a   : > { %v619_v14 = vpop.trf.xlu0 }
 0x24b   : > { %1204 = vmatprep.mubr.msk.bf16.mxu1 %vm551_vm4, %v619_v14 }
 0x24e   : > { %v620_v15 = vpop.trf.xlu0 }
 0x253   : > { %1205 = vmatmul.mubr.msk.bf16.vlgmr.msra.gmra.mrb[8].mxu1 %vm551_vm4, %v620_v15 }
 0x26d   : > { %v707_v22 = vpop.permute.xlu0 %706 }
 0x271   : > { %v750_v45 = vpop.permute.xlu0 %749 }
 0x272   : > { %v765_v6 = vmul.f32 %v750_v45, %v723_v52 }
 0x275   : > { %v864_v47 = vpop.permute.xlu0 %863 }
 0x326   : > { %v1206_v19 = vpop.f32.mrb[8].mxu1 }
 0x327   : > { %v711_v20 = vadd.f32 %v1206_v19, %v702_v18  ;;  %v670_v21 = vpop.f32.mrb[9].mxu1 }
 0x328   : > { %v709_v23 = vadd.f32 %v692_v16, %v670_v21  ;;  %v1207_v24 = vpop.f32.mrb[10].mxu1 }
 0x329   : > { %v712_v25 = vadd.f32 %v1207_v24, %v707_v22  ;;  %v673_v26 = vpop.f32.mrb[11].mxu1  ;;  %v715_v28 = vmax.f32 %v711_v20, 0.0  ;;  %v884_v24 = vpop.permute.xlu1 %883 }
 0x32a   : > { %v710_v27 = vadd.f32 %v697_v17, %v673_v26  ;;  %v713_v30 = vmax.f32 %v709_v23, 0.0  ;;  %v766_v23 = vmul.f32 %v755_v51, %v723_v52 }
 0x32b   : > { %v716_v29 = vmax.f32 %v712_v25, 0.0 }
 0x32c   : > { %v714_v31 = vmax.f32 %v710_v27, 0.0 }
 0x32d   : > { %v725_v32 = vpack.c.bf16 %v716_v29, %v715_v28  ;;  %v767_v29 = vmul.f32 %v760_v54, %v723_v52  ;;  %v927_v42 = vpop.permute.xlu1 %926 }
 0x32e   : > { %v724_v33 = vpack.c.bf16 %v714_v31, %v713_v30 }
 0x330   : > { %1209 = vmatpush3.bf16.msra.mxu0 %v724_v33 }
 0x331   : > { %1210 = vmatprep.subr.bf16.mxu0 %v1311_v11  ;;  %v955_v54 = vpop.permute.xlu1 %954 }
 0x334   : > { %1211 = vmatpush3.bf16.msra.mxu0 %v725_v32 }
 0x337   : > { %1213 = vmatmul.mubr.msk.bf16.vlgmr.msra.gmra.mrb[4].mxu0 %vm783_vm5, %v1279_v34 }
 0x338   : > { %1216 = vmatprep.mubr.msk.bf16.mxu0 %vm1312_vm2, %v1311_v11 }
 0x33f   : > { %1217 = vmatmul.mubr.msk.bf16.gmra.mrb[8].mxu0 %vm783_vm5, %v1280_v35 }
 0x340   : > { %1220 = vmatprep.mubr.msk.bf16.mxu0 %vm1312_vm2, %v1311_v11  ;;  %v869_v11 = vpop.permute.xlu0 %868 }
 0x344   : > { %v874_v53 = vpop.permute.xlu0 %873 }
 0x347   : > { %1221 = vmatmul.mubr.msk.bf16.gmra.mrb[12].mxu0 %vm783_vm5, %v1281_v36 }
 0x348   : > { %v912_v0 = vpop.permute.xlu0 %911 }
 0x34c   : > { %v917_v15 = vpop.permute.xlu0 %916 }
 0x350   : > { %v922_v27 = vpop.permute.xlu0 %921 }
 0x354   : > { %v932_v45 = vpop.permute.xlu0 %931 }
 0x40a   : > { %v827_v56 = vpop.f32.mrb[4].mxu0 }
 0x40b   : > { %v828_v39 = vadd.f32 %v827_v56, %v762_v55  ;;  %v1214_v57 = vpop.f32.mrb[5].mxu0 }
 0x40c   : > { %v830_v59 = vpop.f32.mrb[6].mxu0 }
 0x40d   : > { %v886_v61 = vadd.f32 %v859_v49, %v828_v39  ;;  %v831_v62 = vadd.f32 %v830_v59, %v763_v58  ;;  %v1215_v63 = vpop.f32.mrb[7].mxu0  ;;  %v964_v58 = vlaneseq }
 0x40f   : > { %v892_v1 = vmax.f32 %v886_v61, 0.0  ;;  %v887_v2 = vadd.f32 %v864_v47, %v831_v62  ;;  %v965_v59 = vshrl.u32 %v964_v58, 7 }
 0x411   : > { %v893_v4 = vmax.f32 %v887_v2, 0.0  ;;  %v934_v10 = vmul.f32 %v907_v60, %v892_v1  ;;  %v966_v60 = vsub.s32 0, %v965_v59 }
 0x412   : > { %v835_v5 = vpop.f32.mrb[8].mxu0 }
 0x413   : > { %v935_v12 = vmul.f32 %v912_v0, %v893_v4  ;;  %v836_v13 = vadd.f32 %v835_v5, %v764_v3  ;;  %v1218_v14 = vpop.f32.mrb[9].mxu0 }
 0x414   : > { %v838_v16 = vpop.f32.mrb[10].mxu0 }
 0x415   : > { %v940_v17 = vadd.f32 %v935_v12, %v934_v10  ;;  %v888_v18 = vadd.f32 %v869_v11, %v836_v13  ;;  %v839_v19 = vadd.f32 %v838_v16, %v765_v6  ;;  %v1219_v20 = vpop.f32.mrb[11].mxu0 }
 0x417   : > { %v894_v21 = vmax.f32 %v888_v18, 0.0  ;;  %v889_v22 = vadd.f32 %v874_v53, %v839_v19 }
 0x419   : > { %v936_v25 = vmul.f32 %v917_v15, %v894_v21  ;;  %v895_v26 = vmax.f32 %v889_v22, 0.0 }
 0x41a   : > { %v843_v28 = vpop.f32.mrb[12].mxu0 }
 0x41b   : > { %v941_v30 = vadd.f32 %v940_v17, %v936_v25  ;;  %v937_v31 = vmul.f32 %v922_v27, %v895_v26  ;;  %v844_v32 = vadd.f32 %v843_v28, %v766_v23  ;;  %v1222_v33 = vpop.f32.mrb[13].mxu0 }
 0x41c   : > { %v846_v34 = vpop.f32.mrb[14].mxu0 }
 0x41d   : > { %v942_v35 = vadd.f32 %v941_v30, %v937_v31  ;;  %v890_v36 = vadd.f32 %v879_v9, %v844_v32  ;;  %v847_v37 = vadd.f32 %v846_v34, %v767_v29  ;;  %v1223_v38 = vpop.f32.mrb[15].mxu0 }
 0x41f   : > { %v896_v40 = vmax.f32 %v890_v36, 0.0  ;;  %v891_v41 = vadd.f32 %v884_v24, %v847_v37 }
 0x421   : > { %v938_v43 = vmul.f32 %v927_v42, %v896_v40  ;;  %v897_v44 = vmax.f32 %v891_v41, 0.0 }
 0x423   : > { %v943_v46 = vadd.f32 %v942_v35, %v938_v43  ;;  %v939_v47 = vmul.f32 %v932_v45, %v897_v44 }
 0x425   : > { %v944_v48 = vadd.f32 %v943_v46, %v939_v47 }
 0x427   : > { %v945_v49 = vrot.slane %v944_v48, 4 }
 0x429   : > { %v946_v50 = vadd.f32 %v945_v49, %v944_v48 }
 0x42b   : > { %v947_v11 = vrot.slane %v946_v50, 2 }
 0x42d   : > { %v948_v51 = vadd.f32 %v947_v11, %v946_v50 }
 0x42f   : > { %v949_v52 = vrot.slane %v948_v51, 1 }
 0x431   : > { %v950_v53 = vadd.f32 %v949_v52, %v948_v51 }
 0x433   : > { %v957_v55 = vadd.f32 %v955_v54, %v950_v53 }
 0x435   : > { %v1110_v56 = vmul.f32 -1.442695, %v957_v55 }
 0x437   : > { %1282 = vpow2.f32 %v1110_v56 }
 0x441   : > { %v1283_v39 = vpop.eup %1282 }
 0x442   : > { %v961_v57 = vadd.f32 1.0, %v1283_v39 }
 0x444   : > { %1284 = vrcp.f32 %v961_v57 }
 0x44d   : > { %978 = sbr.rel (!%p1368_p5) target bundleno = 1116 (0x45c), region = 78 }
 0x44e   : > { %v1285_v61 = vpop.eup %1284 }
 0x44f   : > { %v967_v62 = vrot.slane %v1285_v61, %v966_v60 }
 0x451   : > { %v968_v63 = vmul.f32 %v967_v62, %v1394_v7  ;;  %v969_v0 = vmul.f32 %v967_v62, %v1396_v8 }
 0x453   : > { %970 = vst [vmem:[%s233_s7] sm:$0xff] %v968_v63  ;;  %971 = vst [vmem:[%s233_s7 + $0x8] sm:$0xff] %v969_v0 }
 0x45a   : > { %v1010_v1 = vld [vmem:[%s233_s7] sm:$0xff]  ;;  %v1012_v2 = vld [vmem:[%s233_s7 + $0x8] sm:$0xff] }
 0x45b   : > { %1011 = vst [vmem:[%s980_s5] sm:$0xff] %v1010_v1  ;;  %1013 = vst [vmem:[%s980_s5 + $0x10] sm:$0xff] %v1012_v2 }
 0x45c PF: > { %p11_p10 = scmp.ge.s32.totalorder %s1355_s19, 4   ;;  %s1584_s15 = smov %s1304_s16 }
 0x45d   : > { %s1585_s16 = smov %s1366_s22  ;;  %s1586_s17 = smov %s1355_s19 }
 0x45e   :  { %13 = sbr.rel (!%p11_p10) target bundleno = 2 (0x2), region = 147 }

</bundles_post_ra>
